<compile_context>
chip_gen: v6e
topology: v6e:2x2x1
jax: 0.10.0
libtpu: 0.0.40
codegen_flags: <defaults>
</compile_context>

<pallas_src>
import math
import functools

import jax
import jax.numpy as jnp
from jax import lax
from jax.experimental import pallas as pl
from jax.experimental.pallas import tpu as pltpu


def _mha_kernel(x_ref, wq_ref, wk_ref, wv_ref, bq_ref, bk_ref, bv_ref, o_ref,
                *, scale, H, mxu_dtype):
    """One grid step = one batch block, all heads.

    x_ref:  (bb, H, S, hs)      wq/wk/wv_ref: (H, hs, hs)  (nn.Linear (out, in))
    bq/bk/bv_ref: (H, 1, hs)    o_ref: (bb, S, D) with head h at cols [h*hs,(h+1)*hs)
    """
    cast = (lambda a: a.astype(mxu_dtype)) if mxu_dtype is not None else (lambda a: a)

    x = x_ref[...]                       # (bb, H, S, hs)
    S = x.shape[2]

    # Causal mask, built once and reused for every head (hoisted broadcast).
    row = lax.broadcasted_iota(jnp.int32, (S, S), 0)
    col = lax.broadcasted_iota(jnp.int32, (S, S), 1)
    neg = jnp.where(col > row, jnp.float32(-1e30), jnp.float32(0.0))   # (S, S)

    outs = []
    for h in range(H):                   # static loop, unrolled at trace time
        y = cast(x[:, h])                # (bb, S, hs)
        wq = cast(wq_ref[h])             # (hs, hs)
        wk = cast(wk_ref[h])
        wv = cast(wv_ref[h])

        # y @ W.T + b : contracting-dim selection, no explicit transpose.
        # Batch is folded into the matmul M dimension ((bb*S, hs) x (hs, hs)).
        q = jnp.einsum('bsk,ok->bso', y, wq,
                       preferred_element_type=jnp.float32) + bq_ref[h]
        k = jnp.einsum('bsk,ok->bso', y, wk,
                       preferred_element_type=jnp.float32) + bk_ref[h]
        v = jnp.einsum('bsk,ok->bso', y, wv,
                       preferred_element_type=jnp.float32) + bv_ref[h]

        # Scaled dot-product scores with causal mask (f32).
        s = jnp.einsum('bqd,bkd->bqk', cast(q), cast(k),
                       preferred_element_type=jnp.float32) * scale + neg

        # Softmax over the last axis; divide replaced by EUP reciprocal + mul.
        m = jnp.max(s, axis=-1, keepdims=True)
        p = jnp.exp(s - m)
        inv_l = pl.reciprocal(jnp.sum(p, axis=-1, keepdims=True), approx=False)
        attn = p * inv_l

        outs.append(jnp.einsum('bqk,bkd->bqd', cast(attn), cast(v),
                               preferred_element_type=jnp.float32))

    # Single lane-dense store of the concatenated heads (== torch.cat(dim=-1)).
    o_ref[...] = jnp.concatenate(outs, axis=-1).astype(o_ref.dtype)


def masked_attention_block(x, wq, wk, wv, bq, bk, bv, *, D, H,
                           batch_block=None, mxu_dtype=None):
    """x: (B, S, D).  wq/wk/wv: (H, hs, hs).  bq/bk/bv: (H, hs).

    mxu_dtype: optionally jnp.bfloat16 to run MXU matmuls with bf16 operands
    (f32 accumulation) on v6e/v7x.  None keeps everything f32.
    """
    B, S, Dim = x.shape
    assert Dim == D
    hs = D // H
    scale = 1.0 / math.sqrt(D / H)

    bb = B if batch_block is None else batch_block
    assert B % bb == 0, "batch_block must divide B"

    # Same memory reinterpretation as torch `x.view(B, H, S, hs)`.
    xh = x.reshape(B, H, S, hs)
    bq3 = bq.reshape(H, 1, hs)
    bk3 = bk.reshape(H, 1, hs)
    bv3 = bv.reshape(H, 1, hs)

    kernel = functools.partial(_mha_kernel, scale=scale, H=H, mxu_dtype=mxu_dtype)

    x_spec = pl.BlockSpec((bb, H, S, hs), lambda b: (b, 0, 0, 0))
    w_spec = pl.BlockSpec((H, hs, hs), lambda b: (0, 0, 0))   # resident across grid
    b_spec = pl.BlockSpec((H, 1, hs), lambda b: (0, 0, 0))    # resident across grid
    o_spec = pl.BlockSpec((bb, S, D), lambda b: (b, 0, 0))    # final concat layout

    return pl.pallas_call(
        kernel,
        out_shape=jax.ShapeDtypeStruct((B, S, D), x.dtype),
        grid_spec=pltpu.PrefetchScalarGridSpec(
            num_scalar_prefetch=0,
            grid=(B // bb,),
            in_specs=[x_spec, w_spec, w_spec, w_spec, b_spec, b_spec, b_spec],
            out_specs=o_spec,
        ),
        compiler_params=pltpu.CompilerParams(
            dimension_semantics=("parallel",)),
    )(xh, wq, wk, wv, bq3, bk3, bv3)


def _reference_jax(x, wq, wk, wv, bq, bk, bv, *, D, H):
    """Pure-JAX reference (with the intended causal mask)."""
    B, S, Dim = x.shape
    hs = D // H
    xh = x.reshape(B, H, S, hs)
    outs = []
    mask = jnp.triu(jnp.ones((S, S), jnp.float32), k=1)
    neg = jnp.where(mask > 0, -jnp.inf, 0.0)
    scale = 1.0 / math.sqrt(D / H)
    for i in range(H):
        y = xh[:, i]
        q = y @ wq[i].T + bq[i]
        k = y @ wk[i].T + bk[i]
        v = y @ wv[i].T + bv[i]
        scores = (q @ jnp.swapaxes(k, -1, -2)) * scale + neg
        attn = jax.nn.softmax(scores, axis=-1)
        outs.append(attn @ v)
    return jnp.concatenate(outs, axis=-1)


if __name__ == "__main__":
    B, S, D, H = 2, 8, 32, 2
    hs = D // H

    key = jax.random.PRNGKey(0)
    kx, kwq, kwk, kwv, kbq, kbk, kbv = jax.random.split(key, 7)

    bound = 1.0 / math.sqrt(hs)  # PyTorch nn.Linear default init range
    x = jax.random.normal(kx, (B, S, D), dtype=jnp.float32)
    wq = jax.random.uniform(kwq, (H, hs, hs), jnp.float32, -bound, bound)
    wk = jax.random.uniform(kwk, (H, hs, hs), jnp.float32, -bound, bound)
    wv = jax.random.uniform(kwv, (H, hs, hs), jnp.float32, -bound, bound)
    bq = jax.random.uniform(kbq, (H, hs), jnp.float32, -bound, bound)
    bk = jax.random.uniform(kbk, (H, hs), jnp.float32, -bound, bound)
    bv = jax.random.uniform(kbv, (H, hs), jnp.float32, -bound, bound)

    out = masked_attention_block(x, wq, wk, wv, bq, bk, bv, D=D, H=H)
    out = jax.block_until_ready(out)

    ref = _reference_jax(x, wq, wk, wv, bq, bk, bv, D=D, H=H)
    assert out.shape == (B, S, D)
    assert jnp.allclose(out, ref, atol=1e-5, rtol=1e-5), "mismatch vs JAX reference"

    print("KERNEL_OK")
</pallas_src>

<mosaic_0001>
module attributes {stable_mosaic.version = 11 : i64} {
  func.func @_mha_kernel(%arg0: i32, %arg1: memref<2x2x8x16xf32, #tpu.memory_space<vmem>>, %arg2: memref<2x16x16xf32, #tpu.memory_space<vmem>>, %arg3: memref<2x16x16xf32, #tpu.memory_space<vmem>>, %arg4: memref<2x16x16xf32, #tpu.memory_space<vmem>>, %arg5: memref<2x1x16xf32, #tpu.memory_space<vmem>>, %arg6: memref<2x1x16xf32, #tpu.memory_space<vmem>>, %arg7: memref<2x1x16xf32, #tpu.memory_space<vmem>>, %arg8: memref<2x8x32xf32, #tpu.memory_space<vmem>>) attributes {dimension_semantics = [#tpu.dimension_semantics<parallel>], iteration_bounds = array<i64: 1>, scalar_prefetch = 0 : i64, scratch_operands = 0 : i64, tpu.core_type = #tpu.core_type<tc>, window_params = [{transform_indices = @transform_0, window_bounds = array<i64: 2, 2, 8, 16>}, {pipeline_mode = #tpu.pipeline_mode<synchronous>, transform_indices = @transform_1, window_bounds = array<i64: 2, 16, 16>}, {pipeline_mode = #tpu.pipeline_mode<synchronous>, transform_indices = @transform_2, window_bounds = array<i64: 2, 16, 16>}, {pipeline_mode = #tpu.pipeline_mode<synchronous>, transform_indices = @transform_3, window_bounds = array<i64: 2, 16, 16>}, {pipeline_mode = #tpu.pipeline_mode<synchronous>, transform_indices = @transform_4, window_bounds = array<i64: 2, 1, 16>}, {pipeline_mode = #tpu.pipeline_mode<synchronous>, transform_indices = @transform_5, window_bounds = array<i64: 2, 1, 16>}, {pipeline_mode = #tpu.pipeline_mode<synchronous>, transform_indices = @transform_6, window_bounds = array<i64: 2, 1, 16>}, {transform_indices = @transform_7, window_bounds = array<i64: 2, 8, 32>}]} {
    %c0 = arith.constant 0 : index
    %c0_0 = arith.constant 0 : index
    %c0_1 = arith.constant 0 : index
    %c0_2 = arith.constant 0 : index
    %0 = vector.load %arg1[%c0, %c0_0, %c0_1, %c0_2] : memref<2x2x8x16xf32, #tpu.memory_space<vmem>>, vector<2x2x8x16xf32>
    %1 = tpu.iota {dimensions = array<i32: 0>} : vector<8x8xi32>
    %2 = tpu.iota {dimensions = array<i32: 1>} : vector<8x8xi32>
    %3 = arith.cmpi sgt, %2, %1 : vector<8x8xi32>
    %cst = arith.constant -1.000000e+30 : f32
    %cst_3 = arith.constant 0.000000e+00 : f32
    %4 = vector.broadcast %cst : f32 to vector<8x8xf32>
    %5 = vector.broadcast %cst_3 : f32 to vector<8x8xf32>
    %6 = arith.select %3, %4, %5 : vector<8x8xi1>, vector<8x8xf32>
    %7 = vector.extract_strided_slice %0 {offsets = [0, 0, 0, 0], sizes = [2, 1, 8, 16], strides = [1, 1, 1, 1]} : vector<2x2x8x16xf32> to vector<2x1x8x16xf32>
    %8 = vector.shape_cast %7 : vector<2x1x8x16xf32> to vector<2x8x16xf32>
    %c0_4 = arith.constant 0 : index
    %c0_5 = arith.constant 0 : index
    %c0_6 = arith.constant 0 : index
    %9 = vector.load %arg2[%c0_4, %c0_5, %c0_6] : memref<2x16x16xf32, #tpu.memory_space<vmem>>, vector<1x16x16xf32>
    %10 = vector.shape_cast %9 : vector<1x16x16xf32> to vector<16x16xf32>
    %c0_7 = arith.constant 0 : index
    %c0_8 = arith.constant 0 : index
    %c0_9 = arith.constant 0 : index
    %11 = vector.load %arg3[%c0_7, %c0_8, %c0_9] : memref<2x16x16xf32, #tpu.memory_space<vmem>>, vector<1x16x16xf32>
    %12 = vector.shape_cast %11 : vector<1x16x16xf32> to vector<16x16xf32>
    %c0_10 = arith.constant 0 : index
    %c0_11 = arith.constant 0 : index
    %c0_12 = arith.constant 0 : index
    %13 = vector.load %arg4[%c0_10, %c0_11, %c0_12] : memref<2x16x16xf32, #tpu.memory_space<vmem>>, vector<1x16x16xf32>
    %14 = vector.shape_cast %13 : vector<1x16x16xf32> to vector<16x16xf32>
    "tpu.trace_start"() <{level = 10 : i32, message = "bsk,ok->bso"}> : () -> ()
    %cst_13 = arith.constant dense<0.000000e+00> : vector<2x8x16xf32>
    %15 = tpu.matmul %8, %10, %cst_13 {dimension_numbers = #tpu.dot_dimension_numbers<[2], [1], [0, 1], [0], [0, 0, 0, 1, 1, 0], [], []>} : vector<2x8x16xf32>, vector<16x16xf32>, vector<2x8x16xf32> -> vector<2x8x16xf32>
    "tpu.trace_stop"() : () -> ()
    %c0_14 = arith.constant 0 : index
    %c0_15 = arith.constant 0 : index
    %c0_16 = arith.constant 0 : index
    %16 = vector.load %arg5[%c0_14, %c0_15, %c0_16] : memref<2x1x16xf32, #tpu.memory_space<vmem>>, vector<1x1x16xf32>
    %17 = vector.shape_cast %16 : vector<1x1x16xf32> to vector<1x16xf32>
    %18 = vector.shape_cast %17 : vector<1x16xf32> to vector<1x1x16xf32>
    %19 = vector.broadcast %18 : vector<1x1x16xf32> to vector<2x8x16xf32>
    %20 = arith.addf %15, %19 : vector<2x8x16xf32>
    "tpu.trace_start"() <{level = 10 : i32, message = "bsk,ok->bso"}> : () -> ()
    %cst_17 = arith.constant dense<0.000000e+00> : vector<2x8x16xf32>
    %21 = tpu.matmul %8, %12, %cst_17 {dimension_numbers = #tpu.dot_dimension_numbers<[2], [1], [0, 1], [0], [0, 0, 0, 1, 1, 0], [], []>} : vector<2x8x16xf32>, vector<16x16xf32>, vector<2x8x16xf32> -> vector<2x8x16xf32>
    "tpu.trace_stop"() : () -> ()
    %c0_18 = arith.constant 0 : index
    %c0_19 = arith.constant 0 : index
    %c0_20 = arith.constant 0 : index
    %22 = vector.load %arg6[%c0_18, %c0_19, %c0_20] : memref<2x1x16xf32, #tpu.memory_space<vmem>>, vector<1x1x16xf32>
    %23 = vector.shape_cast %22 : vector<1x1x16xf32> to vector<1x16xf32>
    %24 = vector.shape_cast %23 : vector<1x16xf32> to vector<1x1x16xf32>
    %25 = vector.broadcast %24 : vector<1x1x16xf32> to vector<2x8x16xf32>
    %26 = arith.addf %21, %25 : vector<2x8x16xf32>
    "tpu.trace_start"() <{level = 10 : i32, message = "bsk,ok->bso"}> : () -> ()
    %cst_21 = arith.constant dense<0.000000e+00> : vector<2x8x16xf32>
    %27 = tpu.matmul %8, %14, %cst_21 {dimension_numbers = #tpu.dot_dimension_numbers<[2], [1], [0, 1], [0], [0, 0, 0, 1, 1, 0], [], []>} : vector<2x8x16xf32>, vector<16x16xf32>, vector<2x8x16xf32> -> vector<2x8x16xf32>
    "tpu.trace_stop"() : () -> ()
    %c0_22 = arith.constant 0 : index
    %c0_23 = arith.constant 0 : index
    %c0_24 = arith.constant 0 : index
    %28 = vector.load %arg7[%c0_22, %c0_23, %c0_24] : memref<2x1x16xf32, #tpu.memory_space<vmem>>, vector<1x1x16xf32>
    %29 = vector.shape_cast %28 : vector<1x1x16xf32> to vector<1x16xf32>
    %30 = vector.shape_cast %29 : vector<1x16xf32> to vector<1x1x16xf32>
    %31 = vector.broadcast %30 : vector<1x1x16xf32> to vector<2x8x16xf32>
    %32 = arith.addf %27, %31 : vector<2x8x16xf32>
    "tpu.trace_start"() <{level = 10 : i32, message = "bqd,bkd->bqk"}> : () -> ()
    %cst_25 = arith.constant dense<0.000000e+00> : vector<2x8x8xf32>
    %33 = tpu.matmul %20, %26, %cst_25 {dimension_numbers = #tpu.dot_dimension_numbers<[2], [2], [1], [1], [0, 0, 0, 1, 1, 1], [0], [0]>} : vector<2x8x16xf32>, vector<2x8x16xf32>, vector<2x8x8xf32> -> vector<2x8x8xf32>
    "tpu.trace_stop"() : () -> ()
    %cst_26 = arith.constant 2.500000e-01 : f32
    %34 = vector.broadcast %cst_26 : f32 to vector<2x8x8xf32>
    %35 = arith.mulf %33, %34 : vector<2x8x8xf32>
    %36 = vector.shape_cast %6 : vector<8x8xf32> to vector<1x8x8xf32>
    %37 = vector.broadcast %36 : vector<1x8x8xf32> to vector<2x8x8xf32>
    %38 = arith.addf %35, %37 : vector<2x8x8xf32>
    %cst_27 = arith.constant dense<0xFF800000> : vector<2x8xf32>
    %39 = vector.multi_reduction <maximumf>, %38, %cst_27 [2] : vector<2x8x8xf32> to vector<2x8xf32>
    %40 = vector.shape_cast %39 : vector<2x8xf32> to vector<2x8x1xf32>
    %41 = vector.broadcast %40 : vector<2x8x1xf32> to vector<2x8x8xf32>
    %42 = arith.subf %38, %41 : vector<2x8x8xf32>
    %43 = math.exp %42 : vector<2x8x8xf32>
    %cst_28 = arith.constant dense<0.000000e+00> : vector<2x8xf32>
    %44 = vector.multi_reduction <add>, %43, %cst_28 [2] : vector<2x8x8xf32> to vector<2x8xf32>
    %45 = vector.shape_cast %44 : vector<2x8xf32> to vector<2x8x1xf32>
    %46 = tpu.reciprocal %45 : vector<2x8x1xf32> -> vector<2x8x1xf32>
    %47 = vector.broadcast %46 : vector<2x8x1xf32> to vector<2x8x8xf32>
    %48 = arith.mulf %43, %47 : vector<2x8x8xf32>
    "tpu.trace_start"() <{level = 10 : i32, message = "bqk,bkd->bqd"}> : () -> ()
    %cst_29 = arith.constant dense<0.000000e+00> : vector<2x8x16xf32>
    %49 = tpu.matmul %48, %32, %cst_29 {dimension_numbers = #tpu.dot_dimension_numbers<[2], [1], [1], [2], [0, 0, 0, 1, 1, 2], [0], [0]>} : vector<2x8x8xf32>, vector<2x8x16xf32>, vector<2x8x16xf32> -> vector<2x8x16xf32>
    "tpu.trace_stop"() : () -> ()
    %50 = vector.extract_strided_slice %0 {offsets = [0, 1, 0, 0], sizes = [2, 1, 8, 16], strides = [1, 1, 1, 1]} : vector<2x2x8x16xf32> to vector<2x1x8x16xf32>
    %51 = vector.shape_cast %50 : vector<2x1x8x16xf32> to vector<2x8x16xf32>
    %c1 = arith.constant 1 : index
    %c0_30 = arith.constant 0 : index
    %c0_31 = arith.constant 0 : index
    %52 = vector.load %arg2[%c1, %c0_30, %c0_31] : memref<2x16x16xf32, #tpu.memory_space<vmem>>, vector<1x16x16xf32>
    %53 = vector.shape_cast %52 : vector<1x16x16xf32> to vector<16x16xf32>
    %c1_32 = arith.constant 1 : index
    %c0_33 = arith.constant 0 : index
    %c0_34 = arith.constant 0 : index
    %54 = vector.load %arg3[%c1_32, %c0_33, %c0_34] : memref<2x16x16xf32, #tpu.memory_space<vmem>>, vector<1x16x16xf32>
    %55 = vector.shape_cast %54 : vector<1x16x16xf32> to vector<16x16xf32>
    %c1_35 = arith.constant 1 : index
    %c0_36 = arith.constant 0 : index
    %c0_37 = arith.constant 0 : index
    %56 = vector.load %arg4[%c1_35, %c0_36, %c0_37] : memref<2x16x16xf32, #tpu.memory_space<vmem>>, vector<1x16x16xf32>
    %57 = vector.shape_cast %56 : vector<1x16x16xf32> to vector<16x16xf32>
    "tpu.trace_start"() <{level = 10 : i32, message = "bsk,ok->bso"}> : () -> ()
    %cst_38 = arith.constant dense<0.000000e+00> : vector<2x8x16xf32>
    %58 = tpu.matmul %51, %53, %cst_38 {dimension_numbers = #tpu.dot_dimension_numbers<[2], [1], [0, 1], [0], [0, 0, 0, 1, 1, 0], [], []>} : vector<2x8x16xf32>, vector<16x16xf32>, vector<2x8x16xf32> -> vector<2x8x16xf32>
    "tpu.trace_stop"() : () -> ()
    %c1_39 = arith.constant 1 : index
    %c0_40 = arith.constant 0 : index
    %c0_41 = arith.constant 0 : index
    %59 = vector.load %arg5[%c1_39, %c0_40, %c0_41] : memref<2x1x16xf32, #tpu.memory_space<vmem>>, vector<1x1x16xf32>
    %60 = vector.shape_cast %59 : vector<1x1x16xf32> to vector<1x16xf32>
    %61 = vector.shape_cast %60 : vector<1x16xf32> to vector<1x1x16xf32>
    %62 = vector.broadcast %61 : vector<1x1x16xf32> to vector<2x8x16xf32>
    %63 = arith.addf %58, %62 : vector<2x8x16xf32>
    "tpu.trace_start"() <{level = 10 : i32, message = "bsk,ok->bso"}> : () -> ()
    %cst_42 = arith.constant dense<0.000000e+00> : vector<2x8x16xf32>
    %64 = tpu.matmul %51, %55, %cst_42 {dimension_numbers = #tpu.dot_dimension_numbers<[2], [1], [0, 1], [0], [0, 0, 0, 1, 1, 0], [], []>} : vector<2x8x16xf32>, vector<16x16xf32>, vector<2x8x16xf32> -> vector<2x8x16xf32>
    "tpu.trace_stop"() : () -> ()
    %c1_43 = arith.constant 1 : index
    %c0_44 = arith.constant 0 : index
    %c0_45 = arith.constant 0 : index
    %65 = vector.load %arg6[%c1_43, %c0_44, %c0_45] : memref<2x1x16xf32, #tpu.memory_space<vmem>>, vector<1x1x16xf32>
    %66 = vector.shape_cast %65 : vector<1x1x16xf32> to vector<1x16xf32>
    %67 = vector.shape_cast %66 : vector<1x16xf32> to vector<1x1x16xf32>
    %68 = vector.broadcast %67 : vector<1x1x16xf32> to vector<2x8x16xf32>
    %69 = arith.addf %64, %68 : vector<2x8x16xf32>
    "tpu.trace_start"() <{level = 10 : i32, message = "bsk,ok->bso"}> : () -> ()
    %cst_46 = arith.constant dense<0.000000e+00> : vector<2x8x16xf32>
    %70 = tpu.matmul %51, %57, %cst_46 {dimension_numbers = #tpu.dot_dimension_numbers<[2], [1], [0, 1], [0], [0, 0, 0, 1, 1, 0], [], []>} : vector<2x8x16xf32>, vector<16x16xf32>, vector<2x8x16xf32> -> vector<2x8x16xf32>
    "tpu.trace_stop"() : () -> ()
    %c1_47 = arith.constant 1 : index
    %c0_48 = arith.constant 0 : index
    %c0_49 = arith.constant 0 : index
    %71 = vector.load %arg7[%c1_47, %c0_48, %c0_49] : memref<2x1x16xf32, #tpu.memory_space<vmem>>, vector<1x1x16xf32>
    %72 = vector.shape_cast %71 : vector<1x1x16xf32> to vector<1x16xf32>
    %73 = vector.shape_cast %72 : vector<1x16xf32> to vector<1x1x16xf32>
    %74 = vector.broadcast %73 : vector<1x1x16xf32> to vector<2x8x16xf32>
    %75 = arith.addf %70, %74 : vector<2x8x16xf32>
    "tpu.trace_start"() <{level = 10 : i32, message = "bqd,bkd->bqk"}> : () -> ()
    %cst_50 = arith.constant dense<0.000000e+00> : vector<2x8x8xf32>
    %76 = tpu.matmul %63, %69, %cst_50 {dimension_numbers = #tpu.dot_dimension_numbers<[2], [2], [1], [1], [0, 0, 0, 1, 1, 1], [0], [0]>} : vector<2x8x16xf32>, vector<2x8x16xf32>, vector<2x8x8xf32> -> vector<2x8x8xf32>
    "tpu.trace_stop"() : () -> ()
    %cst_51 = arith.constant 2.500000e-01 : f32
    %77 = vector.broadcast %cst_51 : f32 to vector<2x8x8xf32>
    %78 = arith.mulf %76, %77 : vector<2x8x8xf32>
    %79 = vector.shape_cast %6 : vector<8x8xf32> to vector<1x8x8xf32>
    %80 = vector.broadcast %79 : vector<1x8x8xf32> to vector<2x8x8xf32>
    %81 = arith.addf %78, %80 : vector<2x8x8xf32>
    %cst_52 = arith.constant dense<0xFF800000> : vector<2x8xf32>
    %82 = vector.multi_reduction <maximumf>, %81, %cst_52 [2] : vector<2x8x8xf32> to vector<2x8xf32>
    %83 = vector.shape_cast %82 : vector<2x8xf32> to vector<2x8x1xf32>
    %84 = vector.broadcast %83 : vector<2x8x1xf32> to vector<2x8x8xf32>
    %85 = arith.subf %81, %84 : vector<2x8x8xf32>
    %86 = math.exp %85 : vector<2x8x8xf32>
    %cst_53 = arith.constant dense<0.000000e+00> : vector<2x8xf32>
    %87 = vector.multi_reduction <add>, %86, %cst_53 [2] : vector<2x8x8xf32> to vector<2x8xf32>
    %88 = vector.shape_cast %87 : vector<2x8xf32> to vector<2x8x1xf32>
    %89 = tpu.reciprocal %88 : vector<2x8x1xf32> -> vector<2x8x1xf32>
    %90 = vector.broadcast %89 : vector<2x8x1xf32> to vector<2x8x8xf32>
    %91 = arith.mulf %86, %90 : vector<2x8x8xf32>
    "tpu.trace_start"() <{level = 10 : i32, message = "bqk,bkd->bqd"}> : () -> ()
    %cst_54 = arith.constant dense<0.000000e+00> : vector<2x8x16xf32>
    %92 = tpu.matmul %91, %75, %cst_54 {dimension_numbers = #tpu.dot_dimension_numbers<[2], [1], [1], [2], [0, 0, 0, 1, 1, 2], [0], [0]>} : vector<2x8x8xf32>, vector<2x8x16xf32>, vector<2x8x16xf32> -> vector<2x8x16xf32>
    "tpu.trace_stop"() : () -> ()
    %93 = tpu.concatenate %49, %92 in 2 : vector<2x8x16xf32>, vector<2x8x16xf32> -> vector<2x8x32xf32>
    %c0_55 = arith.constant 0 : index
    %c0_56 = arith.constant 0 : index
    %c0_57 = arith.constant 0 : index
    %94 = vector.load %arg8[%c0_55, %c0_56, %c0_57] : memref<2x8x32xf32, #tpu.memory_space<vmem>>, vector<2x8x32xf32>
    tpu.vector_store %arg8[%c0_55, %c0_56, %c0_57], %93 {strides = array<i32>} : memref<2x8x32xf32, #tpu.memory_space<vmem>>, vector<2x8x32xf32>,
    return
  }
  func.func @transform_0(%arg0: i32) -> (i32, i32, i32, i32) {
    %c0_i32 = arith.constant 0 : i32
    %c0_i32_0 = arith.constant 0 : i32
    %c0_i32_1 = arith.constant 0 : i32
    %c0_i32_2 = arith.constant 0 : i32
    return %arg0, %c0_i32, %c0_i32_0, %c0_i32_1 : i32, i32, i32, i32
  }
  func.func @transform_1(%arg0: i32) -> (i32, i32, i32) {
    %c0_i32 = arith.constant 0 : i32
    %c0_i32_0 = arith.constant 0 : i32
    %c0_i32_1 = arith.constant 0 : i32
    %c0_i32_2 = arith.constant 0 : i32
    return %c0_i32, %c0_i32_0, %c0_i32_1 : i32, i32, i32
  }
  func.func @transform_2(%arg0: i32) -> (i32, i32, i32) {
    %c0_i32 = arith.constant 0 : i32
    %c0_i32_0 = arith.constant 0 : i32
    %c0_i32_1 = arith.constant 0 : i32
    %c0_i32_2 = arith.constant 0 : i32
    return %c0_i32, %c0_i32_0, %c0_i32_1 : i32, i32, i32
  }
  func.func @transform_3(%arg0: i32) -> (i32, i32, i32) {
    %c0_i32 = arith.constant 0 : i32
    %c0_i32_0 = arith.constant 0 : i32
    %c0_i32_1 = arith.constant 0 : i32
    %c0_i32_2 = arith.constant 0 : i32
    return %c0_i32, %c0_i32_0, %c0_i32_1 : i32, i32, i32
  }
  func.func @transform_4(%arg0: i32) -> (i32, i32, i32) {
    %c0_i32 = arith.constant 0 : i32
    %c0_i32_0 = arith.constant 0 : i32
    %c0_i32_1 = arith.constant 0 : i32
    %c0_i32_2 = arith.constant 0 : i32
    return %c0_i32, %c0_i32_0, %c0_i32_1 : i32, i32, i32
  }
  func.func @transform_5(%arg0: i32) -> (i32, i32, i32) {
    %c0_i32 = arith.constant 0 : i32
    %c0_i32_0 = arith.constant 0 : i32
    %c0_i32_1 = arith.constant 0 : i32
    %c0_i32_2 = arith.constant 0 : i32
    return %c0_i32, %c0_i32_0, %c0_i32_1 : i32, i32, i32
  }
  func.func @transform_6(%arg0: i32) -> (i32, i32, i32) {
    %c0_i32 = arith.constant 0 : i32
    %c0_i32_0 = arith.constant 0 : i32
    %c0_i32_1 = arith.constant 0 : i32
    %c0_i32_2 = arith.constant 0 : i32
    return %c0_i32, %c0_i32_0, %c0_i32_1 : i32, i32, i32
  }
  func.func @transform_7(%arg0: i32) -> (i32, i32, i32) {
    %c0_i32 = arith.constant 0 : i32
    %c0_i32_0 = arith.constant 0 : i32
    %c0_i32_1 = arith.constant 0 : i32
    return %arg0, %c0_i32, %c0_i32_0 : i32, i32, i32
  }
}

</mosaic_0001>

<bundles_post_ra>
// kernel: tpu_custom_call.1
= control target key start
LH: loop header
LB: loop body
LE: loop exit
PB: predicated region body
PF: predicated region fallthrough
CT: control target
= control target key end

     0   :  { %12 = vsyncpa [#allocation3], 0  ;;  %s1826_s0 = inlined_call_operand.hbm [shape: f32[2,2,8,16], index: 0, kind: input, shape index: {}]   ;;  %s1827_s1 = inlined_call_operand.hbm [shape: f32[2,16,16], index: 1, kind: input, shape index: {}]   ;;  %s1828_s2 = inlined_call_operand.hbm [shape: f32[2,16,16], index: 2, kind: input, shape index: {}]   ;;  %s1829_s3 = inlined_call_operand.hbm [shape: f32[2,16,16], index: 3, kind: input, shape index: {}]   ;;  %s1830_s4 = inlined_call_operand.vmem [shape: f32[2,1,16], index: 4, kind: input, shape index: {}]   ;;  %s1831_s5 = inlined_call_operand.vmem [shape: f32[2,1,16], index: 5, kind: input, shape index: {}]   ;;  %s1832_s6 = inlined_call_operand.vmem [shape: f32[2,1,16], index: 6, kind: input, shape index: {}]   ;;  %s1833_s7 = inlined_call_operand.hbm [shape: f32[2,8,32], index: 7, kind: output, shape index: {}]  }
   0x1   :  { %13 = vsyncpa [#allocation6], 0 }
   0x2   :  { %14 = vsyncpa [#allocation9], 0 }
   0x3   :  { %15 = vsyncpa [#allocation4], 0  ;;  %s1633_s24 = smov [#allocation5]   ;;  %s1634_s26 = smov [#allocation2]  }
   0x4   :  { %s33_s25 = sshll.u32 %s1633_s24, 4  ;;  %s21_s27 = sshll.u32 %s1634_s26, 4  ;;  %s34_s25 = int_to_ptr.vmem [resolvable:$true] %s33_s25  ;;  %s22_s27 = int_to_ptr.vmem [resolvable:$true] %s21_s27 }
   0x5   :  { %s1533_s28 = scalar_lea.vmem %s34_s25, 512  ;;  %p1538_p1 = scmp.lt.s32.totalorder %s34_s25, %s34_s25 }
   0x6   :  { %p1534_p0 = scmp.ne.s32.totalorder %s34_s25, %s1533_s28  ;;  %p1539_p2 = scmp.lt.s32.totalorder %s1533_s28, %s1533_s28 }
   0x8   :  { %p1540_p3 = por %p1539_p2, %p1538_p1 }
   0xa   :  { %p1541_p4 = pnand %p1540_p3, %p1534_p0 }
   0xc   :  { %1544 = shalt.err (!%p1541_p4)
}
   0xd   :  { %s1635_s29 = smov 128   ;;  %s1636_s30 = smov 8  }
   0xe   :  { %39 = dma.hbm_to_vmem [thread:$0]  %s1827_s1, 512, %s34_s25, [#allocation6], %s1635_s29, %s1635_s29, %s1636_s30  }
   0xf   :  { %s1553_s10 = scalar_lea.vmem %s22_s27, 512  ;;  %p1558_p6 = scmp.lt.s32.totalorder %s22_s27, %s22_s27 }
  0x10   :  { %p1554_p5 = scmp.ne.s32.totalorder %s22_s27, %s1553_s10  ;;  %p1559_p7 = scmp.lt.s32.totalorder %s1553_s10, %s1553_s10 }
  0x12   :  { %p1560_p8 = por %p1559_p7, %p1558_p6 }
  0x14   :  { %p1561_p9 = pnand %p1560_p8, %p1554_p5 }
  0x16   :  { %1564 = shalt.err (!%p1561_p9)
}
  0x17   :  { %27 = dma.hbm_to_vmem [thread:$0]  %s1826_s0, 512, %s22_s27, [#allocation3], %s1635_s29, %s1635_s29, %s1636_s30  }
  0x18   :  { %s1637_s13 = smov [#allocation7]   ;;  %s1638_s15 = smov [#allocation8]  }
  0x19   :  { %s45_s14 = sshll.u32 %s1637_s13, 4  ;;  %s57_s16 = sshll.u32 %s1638_s15, 4  ;;  %s46_s14 = int_to_ptr.vmem [resolvable:$true] %s45_s14  ;;  %s58_s16 = int_to_ptr.vmem [resolvable:$true] %s57_s16 }
  0x1a   :  { %s1573_s1 = scalar_lea.vmem %s46_s14, 512  ;;  %p1578_p11 = scmp.lt.s32.totalorder %s46_s14, %s46_s14 }
  0x1b   :  { %p1574_p10 = scmp.ne.s32.totalorder %s46_s14, %s1573_s1  ;;  %p1579_p12 = scmp.lt.s32.totalorder %s1573_s1, %s1573_s1 }
  0x1d   :  { %p1580_p13 = por %p1579_p12, %p1578_p11 }
  0x1f   :  { %p1581_p0 = pnand %p1580_p13, %p1574_p10 }
  0x21   :  { %1584 = shalt.err (!%p1581_p0)
}
  0x22   :  { %51 = dma.hbm_to_vmem [thread:$0]  %s1828_s2, 512, %s46_s14, [#allocation6], %s1635_s29, %s1635_s29, %s1636_s30  }
  0x23   :  { %s1593_s0 = scalar_lea.vmem %s58_s16, 512  ;;  %p1598_p2 = scmp.lt.s32.totalorder %s58_s16, %s58_s16 }
  0x24   :  { %p1594_p1 = scmp.ne.s32.totalorder %s58_s16, %s1593_s0  ;;  %p1599_p3 = scmp.lt.s32.totalorder %s1593_s0, %s1593_s0 }
  0x26   :  { %p1600_p4 = por %p1599_p3, %p1598_p2 }
  0x28   :  { %p1601_p5 = pnand %p1600_p4, %p1594_p1 }
  0x2a   :  { %1604 = shalt.err (!%p1601_p5)
}
  0x2b   :  { %63 = dma.hbm_to_vmem [thread:$0]  %s1829_s3, 512, %s58_s16, [#allocation9], %s1635_s29, %s1635_s29, %s1636_s30  }
  0x2c   :  { %1625 = dma.done.wait [#allocation3], 512  }
  0x2d   :  { %1626 = vsyncadd [#allocation3], 4294966784 }
  0x2e   :  { %1627 = dma.done.wait [#allocation6], 1024  }
  0x2f   :  { %1628 = vsyncadd [#allocation6], 4294966272 }
  0x30   :  { %1629 = dma.done.wait [#allocation9], 512  }
  0x31   :  { %1630 = vsyncadd [#allocation9], 4294966784  ;;  %vm105_vm0 = vcmask 130048   ;;  %v95_v0 = vld [vmem:[#allocation7 + $0x8] sm:$0xff]  ;;  %v94_v2 = vld [vmem:[#allocation7] sm:$0xff]  ;;  %v1639_v6 = vmov 0.0   ;;  %v86_v19 = vlaneseq }
  0x32   :  { %v93_v1 = vld [vmem:[#allocation5 + $0x8] sm:$0xff]  ;;  %1424 = vmatprep.subr.msk.mxu1 %vm105_vm0, %v95_v0  ;;  %v92_v3 = vld [vmem:[#allocation5] sm:$0xff]  ;;  %v84_v5 = vld [vmem:[#allocation2 + $0x10] sm:$0xff]  ;;  %vm1640_vm1 = vmmov 0   ;;  %vm525_vm3 = vcmask 64512   ;;  %s1641_s8 = smov 16  }
  0x33   :  { %1417 = vmatprep.subr.msk.mxu0 %vm105_vm0, %v93_v1  ;;  %v82_v4 = vld [vmem:[#allocation2] sm:$0xff]  ;;  %1425 = vmatpush3.xpose.msk.msra.mxu1 %vm105_vm0, %v95_v0  ;;  %v97_v17 = vld [vmem:[#allocation8 + $0x8] sm:$0xff]  ;;  %v87_v20 = vshrl.u32 %v86_v19, 7  ;;  %v89_v21 = vand.u32 127, %v86_v19  ;;  %v699_v46 = vld [vmem:[#allocation7 + $0x18] sm:$0xff]  ;;  %vm1310_vm4 = vcmask 261120  }
  0x34   :  { %1418 = vmatpush3.xpose.msk.msra.mxu0 %vm105_vm0, %v93_v1  ;;  %1426 = vmatprep.subr.msk.mxu1 %vm105_vm0, %v94_v2  ;;  %v1337_v9 = vld [vmem:[%s1831_s5] ss:$0 sm:$0xff]  ;;  %v696_v49 = vld [vmem:[#allocation5 + $0x18] sm:$0xff]  ;;  %v83_v54 = vld [vmem:[#allocation2 + $0x8] sm:$0xff] }
  0x35   :  { %1419 = vmatprep.subr.msk.mxu0 %vm105_vm0, %v92_v3  ;;  %1428 = vmatprep.mubr.msk.f32.mxu1 %vm105_vm0, %v82_v4  ;;  %v1332_v11 = vld [vmem:[%s1830_s4] ss:$0 sm:$0xff]  ;;  %vm90_vm2 = vcmp.gt.s32.totalorder %v89_v21, %v87_v20  ;;  %v698_v55 = vld [vmem:[#allocation7 + $0x10] sm:$0xff]  ;;  %v85_v59 = vld [vmem:[#allocation2 + $0x18] sm:$0xff] }
  0x36   :  { %1421 = vmatprep.mubr.msk.f32.mxu0 %vm105_vm0, %v82_v4  ;;  %v96_v18 = vld [vmem:[#allocation8] sm:$0xff]  ;;  %v1748_v28 = vsel %vm90_vm2, -1e+30, %v1639_v6  ;;  %v695_v58 = vld [vmem:[#allocation5 + $0x10] sm:$0xff] }
  0x37   :  { %1427 = vmatpush3.xpose.msk.msra.mxu1 %vm105_vm0, %v94_v2  ;;  %v1342_v44 = vld [vmem:[%s1832_s6] ss:$0 sm:$0xff]  ;;  %v1360_v1 = vld [vmem:[%s1831_s5 + $0x1] ss:$0 sm:$0xff] }
  0x38   :  { %1420 = vmatpush3.xpose.msk.msra.mxu0 %vm105_vm0, %v92_v3  ;;  %1438 = vmatprep.subr.mxu1 %v1639_v6 }
  0x39   :  { %1431 = vmatprep.subr.msk.mxu0 %vm105_vm0, %v97_v17 }
  0x3a   :  { %1429 = vmatmul.mubr.msk.f32.vlgmr.msra.gmra.mxu1 %vm105_vm0, %v84_v5 }
  0x3b   :  { %1422 = vmatmul.mubr.msk.f32.vlgmr.msra.gmra.mxu0 %vm105_vm0, %v84_v5  ;;  %1440 = vmatprep.mubr.msk.f32.mxu1 %vm1640_vm1, %v1639_v6 }
  0x3c   :  { %1435 = vmatprep.mubr.msk.f32.mxu0 %vm105_vm0, %v82_v4  ;;  %1432 = vmatpush3.xpose.msk.msra.mxu0 %vm105_vm0, %v97_v17 }
  0x3d   :  { %1433 = vmatprep.subr.msk.mxu0 %vm105_vm0, %v96_v18 }
  0x40   :  { %1434 = vmatpush3.xpose.msk.msra.mxu0 %vm105_vm0, %v96_v18 }
  0x41   :  { %1448 = vmatprep.subr.mxu0 %v1639_v6 }
  0x43   :  { %1436 = vmatmul.mubr.msk.f32.vlgmr.msra.gmra.mxu0 %vm105_vm0, %v84_v5  ;;  %v1354_v5 = vld [vmem:[%s1830_s4 + $0x1] ss:$0 sm:$0xff] }
  0x44   :  { %1450 = vmatprep.mubr.msk.f32.mxu0 %vm1640_vm1, %v1639_v6 }
  0xfa   :  { %v1430_v7 = vpop.f32.mrf.mxu1 }
  0xfb   :  { %v1423_v8 = vpop.f32.mrf.mxu0  ;;  %v278_v15 = vadd.f32 %v1430_v7, %v1337_v9 }
  0xfc   :  { %v272_v10 = vpop.f32.mrf.mxu1  ;;  %v190_v16 = vadd.f32 %v1423_v8, %v1332_v11 }
  0xfd   :  { %v273_v12 = vadd.f32 %v1337_v9, %v272_v10  ;;  %v184_v13 = vpop.f32.mrf.mxu0 }
  0xfe   :  { %v185_v14 = vadd.f32 %v1332_v11, %v184_v13  ;;  %v702_v11 = vld [vmem:[#allocation8 + $0x18] sm:$0xff] }
  0xff   :  { %1439 = vmatpush3.xpose.msk.msra.mxu1 %vm105_vm0, %v273_v12  ;;  %v701_v12 = vld [vmem:[#allocation8 + $0x10] sm:$0xff] }
 0x100   :  { %1443 = vmatprep.subr.mxu1 %v1639_v6 }
 0x102   :  { %1441 = vmatmul.mubr.msk.f32.vlgmr.msra.gmra.mxu1 %vm105_vm0, %v185_v14 }
 0x103   :  { %1444 = vmatpush3.xpose.msk.msra.mxu1 %vm105_vm0, %v278_v15  ;;  %1445 = vmatprep.mubr.msk.f32.mxu1 %vm1640_vm1, %v1639_v6  ;;  %v1437_v43 = vpop.f32.mrf.mxu0 }
 0x104   :  { %1453 = vmatprep.subr.mxu1 %v1639_v6  ;;  %v366_v45 = vadd.f32 %v1437_v43, %v1342_v44 }
 0x105   :  { %v360_v47 = vpop.f32.mrf.mxu0 }
 0x106   :  { %1446 = vmatmul.mubr.msk.f32.vlgmr.msra.gmra.mxu1 %vm105_vm0, %v190_v16  ;;  %v361_v48 = vadd.f32 %v1342_v44, %v360_v47 }
 0x107   :  { %1455 = vmatprep.mubr.msk.f32.mxu1 %vm1640_vm1, %v1639_v6  ;;  %1454 = vmatpush3.msra.mxu1 %v366_v45 }
 0x108   :  { %1465 = vmatprep.subr.msk.mxu1 %vm105_vm0, %v699_v46  ;;  %1449 = vmatpush3.msra.mxu0 %v361_v48 }
 0x109   :  { %1458 = vmatprep.subr.msk.mxu0 %vm105_vm0, %v696_v49 }
 0x1c2   :  { %v441_v22 = vpop.f32.mrf.mxu1 }
 0x1c3   :  { %v521_v25 = vmul.f32 0.25, %v441_v22 }
 0x1c4   :  { %v1442_v23 = vpop.f32.mrf.mxu1 }
 0x1c5   :  { %v523_v31 = vadd.f32 %v521_v25, %v1748_v28 }
 0x1c6   :  { %v517_v24 = vpop.f32.mrf.mxu1 }
 0x1c7   :  { %v522_v26 = vmul.f32 0.25, %v517_v24  ;;  %v526_v32 = vsel %vm525_vm3, %v523_v31, -inf }
 0x1c8   :  { %v1447_v27 = vpop.f32.mrf.mxu1 }
 0x1c9   :  { %v524_v29 = vadd.f32 %v522_v26, %v1748_v28 }
 0x1cb   :  { %v529_v30 = vsel %vm525_vm3, %v524_v29, -inf }
 0x1cc   :  { %530 = vmax.xlane.f32.xlu0 %v529_v30 }
 0x1d0   :  { %527 = vmax.xlane.f32.xlu0 %v526_v32 }
 0x255   :  { %v531_v33 = vpop.xlane.xlu0 %530 }
 0x256   :  { %v533_v34 = vsub.f32 %v524_v29, %v531_v33  ;;  %v1366_v33 = vld [vmem:[%s1832_s6 + $0x1] ss:$0 sm:$0xff]  ;;  %s1642_s6 = smov [#allocation10]  }
 0x257   :  { %s1318_s9 = sshll.u32 %s1642_s6, 4  ;;  %s1319_s9 = int_to_ptr.vmem [resolvable:$true] %s1318_s9 }
 0x258   :  { %v536_v35 = vmul.f32 1.442695, %v533_v34  ;;  %s1605_s10 = scalar_lea.vmem %s1319_s9, 256  ;;  %p1610_p7 = scmp.lt.s32.totalorder %s1319_s9, %s1319_s9 }
 0x259   :  { %v528_v36 = vpop.xlane.xlu0 %527  ;;  %p1606_p6 = scmp.ne.s32.totalorder %s1319_s9, %s1605_s10  ;;  %p1611_p8 = scmp.lt.s32.totalorder %s1605_s10, %s1605_s10 }
 0x25a   :  { %1509 = vpow2.f32 %v536_v35  ;;  %v532_v37 = vsub.f32 %v523_v31, %v528_v36 }
 0x25b   :  { %p1612_p9 = por %p1611_p8, %p1610_p7 }
 0x25c   :  { %v534_v38 = vmul.f32 1.442695, %v532_v37 }
 0x25d   :  { %p1613_p10 = pnand %p1612_p9, %p1606_p6 }
 0x25e   :  { %1511 = vpow2.f32 %v534_v38 }
 0x267   :  { %v1510_v39 = vpop.eup %1509 }
 0x268   :  { %v541_v40 = vsel %vm525_vm3, %v1510_v39, 0.0 }
 0x269   :  { %542 = vadd.xlane.f32.xlu1 %v541_v40 }
 0x26b   :  { %v1512_v41 = vpop.eup %1511 }
 0x26c   :  { %v538_v42 = vsel %vm525_vm3, %v1512_v41, 0.0 }
 0x26d   :  { %539 = vadd.xlane.f32.xlu1 %v538_v42 }
 0x2f2   :  { %v543_v50 = vpop.xlane.xlu1 %542 }
 0x2f3   :  { %1513 = vrcp.f32 %v543_v50 }
 0x2f6   :  { %v540_v51 = vpop.xlane.xlu1 %539 }
 0x2f7   :  { %1515 = vrcp.f32 %v540_v51 }
 0x300   :  { %v1514_v52 = vpop.eup %1513 }
 0x301   :  { %v547_v53 = vmul.f32 %v1514_v52, %v1510_v39 }
 0x303   :  { %1456 = vmatmul.mubr.msk.f32.vlgmr.msra.gmra.mxu1 %vm525_vm3, %v547_v53 }
 0x304   :  { %v1516_v56 = vpop.eup %1515  ;;  %1466 = vmatpush3.xpose.msk.msra.mxu1 %vm105_vm0, %v699_v46  ;;  %1469 = vmatprep.mubr.msk.f32.mxu1 %vm105_vm0, %v83_v54 }
 0x305   :  { %1467 = vmatprep.subr.msk.mxu1 %vm105_vm0, %v698_v55  ;;  %v546_v57 = vmul.f32 %v1516_v56, %v1512_v41 }
 0x307   :  { %1451 = vmatmul.mubr.msk.f32.vlgmr.msra.gmra.mxu0 %vm525_vm3, %v546_v57 }
 0x308   :  { %1459 = vmatpush3.xpose.msk.msra.mxu0 %vm105_vm0, %v696_v49  ;;  %1468 = vmatpush3.xpose.msk.msra.mxu1 %vm105_vm0, %v698_v55 }
 0x309   :  { %1460 = vmatprep.subr.msk.mxu0 %vm105_vm0, %v695_v58  ;;  %1462 = vmatprep.mubr.msk.f32.mxu0 %vm105_vm0, %v83_v54 }
 0x30a   :  { %1479 = vmatprep.subr.mxu1 %v1639_v6 }
 0x30b   :  { %1470 = vmatmul.mubr.msk.f32.vlgmr.msra.gmra.mxu1 %vm105_vm0, %v85_v59 }
 0x30c   :  { %1461 = vmatpush3.xpose.msk.msra.mxu0 %vm105_vm0, %v695_v58  ;;  %1481 = vmatprep.mubr.msk.f32.mxu1 %vm1640_vm1, %v1639_v6 }
 0x30d   :  { %1472 = vmatprep.subr.msk.mxu0 %vm105_vm0, %v702_v11 }
 0x30f   :  { %1463 = vmatmul.mubr.msk.f32.vlgmr.msra.gmra.mxu0 %vm105_vm0, %v85_v59 }
 0x310   :  { %1476 = vmatprep.mubr.msk.f32.mxu0 %vm105_vm0, %v83_v54  ;;  %1473 = vmatpush3.xpose.msk.msra.mxu0 %vm105_vm0, %v702_v11 }
 0x311   :  { %1474 = vmatprep.subr.msk.mxu0 %vm105_vm0, %v701_v12 }
 0x314   :  { %1475 = vmatpush3.xpose.msk.msra.mxu0 %vm105_vm0, %v701_v12 }
 0x315   :  { %1489 = vmatprep.subr.mxu0 %v1639_v6 }
 0x317   :  { %1477 = vmatmul.mubr.msk.f32.vlgmr.msra.gmra.mxu0 %vm105_vm0, %v85_v59 }
 0x318   :  { %1491 = vmatprep.mubr.msk.f32.mxu0 %vm1640_vm1, %v1639_v6 }
 0x3c3   :  { %v1777_v60 = vpop.f32.mrf.mxu1 }
 0x3c5   :  { %v1457_v61 = vpop.f32.mrf.mxu1 }
 0x3c7   :  { %v1779_v62 = vpop.f32.mrf.mxu0 }
 0x3c9   :  { %v1452_v63 = vpop.f32.mrf.mxu0 }
 0x3cb   :  { %v1471_v0 = vpop.f32.mrf.mxu1 }
 0x3cc   :  { %v884_v9 = vadd.f32 %v1471_v0, %v1360_v1 }
 0x3cd   :  { %v878_v2 = vpop.f32.mrf.mxu1 }
 0x3ce   :  { %v879_v3 = vadd.f32 %v1360_v1, %v878_v2 }
 0x3cf   :  { %v1464_v4 = vpop.f32.mrf.mxu0 }
 0x3d0   :  { %1480 = vmatpush3.xpose.msk.msra.mxu1 %vm105_vm0, %v879_v3  ;;  %v795_v10 = vadd.f32 %v1464_v4, %v1354_v5 }
 0x3d1   :  { %v789_v7 = vpop.f32.mrf.mxu0  ;;  %1484 = vmatprep.subr.mxu1 %v1639_v6 }
 0x3d2   :  { %v790_v8 = vadd.f32 %v1354_v5, %v789_v7 }
 0x3d4   :  { %1482 = vmatmul.mubr.msk.f32.vlgmr.msra.gmra.mxu1 %vm105_vm0, %v790_v8 }
 0x3d5   :  { %1485 = vmatpush3.xpose.msk.msra.mxu1 %vm105_vm0, %v884_v9  ;;  %1486 = vmatprep.mubr.msk.f32.mxu1 %vm1640_vm1, %v1639_v6 }
 0x3d6   :  { %1494 = vmatprep.subr.mxu1 %v1639_v6 }
 0x3d8   :  { %1487 = vmatmul.mubr.msk.f32.vlgmr.msra.gmra.mxu1 %vm105_vm0, %v795_v10 }
 0x3d9   :  { %1496 = vmatprep.mubr.msk.f32.mxu1 %vm1640_vm1, %v1639_v6 }
 0x494   :  { %v1048_v13 = vpop.f32.mrf.mxu1 }
 0x495   :  { %v1128_v14 = vmul.f32 0.25, %v1048_v13 }
 0x496   :  { %v1483_v15 = vpop.f32.mrf.mxu1 }
 0x497   :  { %v1130_v16 = vadd.f32 %v1128_v14, %v1748_v28 }
 0x498   :  { %v1124_v17 = vpop.f32.mrf.mxu1 }
 0x499   :  { %v1129_v18 = vmul.f32 0.25, %v1124_v17  ;;  %v1132_v19 = vsel %vm525_vm3, %v1130_v16, -inf }
 0x49a   :  { %1133 = vmax.xlane.f32.xlu0 %v1132_v19  ;;  %v1488_v20 = vpop.f32.mrf.mxu1 }
 0x49b   :  { %v1131_v21 = vadd.f32 %v1129_v18, %v1748_v28  ;;  %v1478_v28 = vpop.f32.mrf.mxu0 }
 0x49c   :  { %v973_v34 = vadd.f32 %v1478_v28, %v1366_v33 }
 0x49d   :  { %v1135_v22 = vsel %vm525_vm3, %v1131_v21, -inf  ;;  %v967_v35 = vpop.f32.mrf.mxu0 }
 0x49e   :  { %1136 = vmax.xlane.f32.xlu1 %v1135_v22  ;;  %v968_v36 = vadd.f32 %v1366_v33, %v967_v35  ;;  %1495 = vmatpush3.msra.mxu1 %v973_v34 }
 0x4a0   :  { %1490 = vmatpush3.msra.mxu0 %v968_v36 }
 0x523   :  { %v1134_v23 = vpop.xlane.xlu0 %1133 }
 0x524   :  { %v1138_v24 = vsub.f32 %v1130_v16, %v1134_v23 }
 0x526   :  { %v1140_v25 = vmul.f32 1.442695, %v1138_v24 }
 0x527   :  { %v1137_v6 = vpop.xlane.xlu1 %1136 }
 0x528   :  { %1517 = vpow2.f32 %v1140_v25  ;;  %v1139_v26 = vsub.f32 %v1131_v21, %v1137_v6 }
 0x52a   :  { %v1142_v27 = vmul.f32 1.442695, %v1139_v26 }
 0x52c   :  { %1519 = vpow2.f32 %v1142_v27 }
 0x535   :  { %v1518_v29 = vpop.eup %1517 }
 0x536   :  { %v1144_v30 = vsel %vm525_vm3, %v1518_v29, 0.0 }
 0x537   :  { %1145 = vadd.xlane.f32.xlu0 %v1144_v30 }
 0x539   :  { %v1520_v31 = vpop.eup %1519 }
 0x53a   :  { %v1147_v32 = vsel %vm525_vm3, %v1520_v31, 0.0 }
 0x53b   :  { %1148 = vadd.xlane.f32.xlu1 %v1147_v32 }
 0x5c0   :  { %v1146_v37 = vpop.xlane.xlu0 %1145 }
 0x5c1   :  { %1521 = vrcp.f32 %v1146_v37 }
 0x5c4   :  { %v1149_v38 = vpop.xlane.xlu1 %1148 }
 0x5c5   :  { %1523 = vrcp.f32 %v1149_v38 }
 0x5ce   :  { %v1522_v39 = vpop.eup %1521 }
 0x5cf   :  { %v1152_v40 = vmul.f32 %v1522_v39, %v1518_v29 }
 0x5d1   :  { %1492 = vmatmul.mubr.msk.f32.vlgmr.msra.gmra.mxu0 %vm525_vm3, %v1152_v40 }
 0x5d2   :  { %v1524_v41 = vpop.eup %1523 }
 0x5d3   :  { %v1153_v42 = vmul.f32 %v1524_v41, %v1520_v31 }
 0x5d5   :  { %1497 = vmatmul.mubr.msk.f32.vlgmr.msra.gmra.mxu1 %vm525_vm3, %v1153_v42 }
 0x691   :  { %v1223_v43 = vpop.f32.mrf.mxu0 }
 0x692   :  { %1302 = vrot.lane.b32.xlu0 %v1223_v43, %s1641_s8 }
 0x693   :  { %v1493_v44 = vpop.f32.mrf.mxu0 }
 0x695   :  { %v1296_v45 = vpop.f32.mrf.mxu1 }
 0x696   :  { %1304 = vrot.lane.b32.xlu1 %v1296_v45, %s1641_s8 }
 0x697   :  { %v1498_v46 = vpop.f32.mrf.mxu1 }
 0x704   :  { %v1303_v47 = vpop.permute.xlu0 %1302 }
 0x705   :  { %v1308_v48 = vsel %vm105_vm0, %v1779_v62, %v1303_v47 }
 0x706   :  { %1311 = vst.msk [vmem:[#allocation10] sm:$0xff] %vm1310_vm4, %v1308_v48 }
 0x708   :  { %v1305_v49 = vpop.permute.xlu1 %1304 }
 0x709   :  { %v1309_v50 = vsel %vm105_vm0, %v1777_v60, %v1305_v49 }
 0x70a   :  { %1312 = vst.msk [vmem:[#allocation10 + $0x8] sm:$0xff] %vm1310_vm4, %v1309_v50 }
 0x70b   :  { %1616 = shalt.err (!%p1613_p10)
}
 0x70c   :  { %1324 = dma.vmem_to_hbm [thread:$0]  %s1319_s9, 256, %s1833_s7, [#allocation4], %s1635_s29, %s1635_s29, %s1636_s30  }
 0x70d   :  { %1631 = dma.done.wait [#allocation4], 256  }
 0x70e   :  { %1632 = vsyncadd [#allocation4], 4294967040 }
 0x70f   :  { %1328 = vsyncpa [#allocation3], 1 }
 0x710   :  { %1329 = vsyncpa [#allocation6], 1 }
 0x711   :  { %1330 = vsyncpa [#allocation9], 1 }
 0x712   :  { %1331 = vsyncpa [#allocation4], 1 }

</bundles_post_ra>
